<compile_context>
chip_gen: v7x
topology: tpu7x:2x2x1
jax: 0.10.0
libtpu: 0.0.40
codegen_flags: <defaults>
</compile_context>

<pallas_src>
import functools
import math

import jax
import jax.numpy as jnp
from jax.experimental import pallas as pl
from jax.experimental.pallas import tpu as pltpu


_REDUCE_BLOCK_BYTES = 6 * 1024 * 1024   # per-input block; 2 streams x 2 bufs ~ 24 MiB
_ELEM_BLOCK_BYTES = 4 * 1024 * 1024     # per-stream block; 3 streams x 2 bufs ~ 24 MiB
_VMEM_LIMIT_BYTES = 32 * 1024 * 1024    # explicit scoped-VMEM limit (safe on v5e/v6e/v7x)


def _round_up(x, m):
    return -(-x // m) * m


def _lane_width(n):
    """Largest power-of-two lane width <= 128 dividing n (free reshape, no padding)."""
    l = 128
    while n % l:
        l //= 2
    return l


def _sublane_align(dtype):
    itemsize = jnp.dtype(dtype).itemsize
    return 8 * max(1, 4 // itemsize)   # 8 for f32, 16 for bf16/f16, 32 for int8


def _pick_row_tile(m, cap_rows, align):
    """Row tile that is a multiple of `align` (or == m), aiming for >= 2 grid blocks."""
    if m <= align:
        return m
    cap = max(align, (cap_rows // align) * align)
    two_blocks = _round_up(_round_up(m, 2) // 2, align)   # ceil(m/2) rounded to align
    return min(cap, two_blocks)


def _mse_reduce_kernel(pred_ref, gt_ref, out_ref, acc_ref, *,
                       inv_d, rows, row_tile, mask_rows):
    """Per-sample mean of squared error.

    pred_ref / gt_ref : (b_tile, r_tile, L) VMEM input blocks.
    out_ref           : (b_tile, 1, L) f32 VMEM output block (mean broadcast over lanes).
    acc_ref           : (b_tile, 1, L) f32 VMEM scratch (lane-wise partial sums).
    Grid: (batch_blocks, num_chunks); chunk axis (innermost) is the reduction.
    """
    k = pl.program_id(1)

    @pl.when(k == 0)
    def _():
        acc_ref[...] = jnp.zeros_like(acc_ref)

    d = pred_ref[...].astype(jnp.float32) - gt_ref[...].astype(jnp.float32)
    sq = d * d
    if mask_rows:
        # Ragged final chunk: rows beyond `rows` hold unspecified data -> zero them.
        row = jax.lax.broadcasted_iota(jnp.int32, sq.shape, 1) + k * row_tile
        sq = jnp.where(row < rows, sq, 0.0)
    acc_ref[...] += jnp.sum(sq, axis=1, keepdims=True)

    @pl.when(k == pl.num_programs(1) - 1)
    def _():
        total = jnp.sum(acc_ref[...], axis=2, keepdims=True) * inv_d
        out_ref[...] = jnp.broadcast_to(total, out_ref.shape).astype(out_ref.dtype)


def _mse_elem_kernel(pred_ref, gt_ref, out_ref):
    """Elementwise squared error (reduction='none' path)."""
    d = pred_ref[...].astype(jnp.float32) - gt_ref[...].astype(jnp.float32)
    out_ref[...] = (d * d).astype(out_ref.dtype)


def _reduce_path(pred, gt):
    N = pred.shape[0]
    D = math.prod(pred.shape[1:])
    L = _lane_width(D)                 # NOTE: degenerates for odd D (L small); still correct.
    R = D // L
    align = max(_sublane_align(pred.dtype), _sublane_align(gt.dtype))
    itemsize = max(jnp.dtype(pred.dtype).itemsize, jnp.dtype(gt.dtype).itemsize)
    budget_rows = max(align, _REDUCE_BLOCK_BYTES // (max(L, 128) * itemsize))

    p = pred.reshape(N, R, L)          # free reshape, no padding copies
    g = gt.reshape(N, R, L)

    if R > budget_rows:
        r_tile = (budget_rows // align) * align
        b_tile = 1
    else:
        r_tile = R                     # full-extent dim: always a legal block dim
        b_tile = max(1, budget_rows // max(R, 1))
        if N >= 2:
            b_tile = min(b_tile, _round_up(N, 2) // 2)   # >= 2 batch blocks (v7x megacore)
        b_tile = min(b_tile, N)

    num_chunks = pl.cdiv(R, r_tile)
    mask_rows = (R % r_tile) != 0

    kernel = functools.partial(
        _mse_reduce_kernel, inv_d=1.0 / float(D),
        rows=R, row_tile=r_tile, mask_rows=mask_rows)

    out = pl.pallas_call(
        kernel,
        out_shape=jax.ShapeDtypeStruct((N, 1, L), jnp.float32),
        grid=(pl.cdiv(N, b_tile), num_chunks),
        in_specs=[
            pl.BlockSpec((b_tile, r_tile, L), lambda b, k: (b, k, 0)),
            pl.BlockSpec((b_tile, r_tile, L), lambda b, k: (b, k, 0)),
        ],
        out_specs=pl.BlockSpec((b_tile, 1, L), lambda b, k: (b, 0, 0)),
        scratch_shapes=[pltpu.VMEM((b_tile, 1, L), jnp.float32)],
        compiler_params=pltpu.CompilerParams(
            dimension_semantics=("parallel", "arbitrary"),
            vmem_limit_bytes=_VMEM_LIMIT_BYTES),
    )(p, g)
    # Mean is broadcast across the L lanes; take lane 0 (tiny (N,) gather).
    return out[:, 0, 0].astype(pred.dtype)


def _elem_path(pred, gt):
    shape = pred.shape
    total = math.prod(shape)
    L = _lane_width(total)
    M = total // L
    align = max(_sublane_align(pred.dtype), _sublane_align(gt.dtype))
    itemsize = max(jnp.dtype(pred.dtype).itemsize, jnp.dtype(gt.dtype).itemsize)
    budget_rows = max(align, _ELEM_BLOCK_BYTES // (max(L, 128) * itemsize))
    row_tile = _pick_row_tile(M, budget_rows, align)

    p = pred.reshape(M, L)             # free reshape, no padding copies
    g = gt.reshape(M, L)

    out = pl.pallas_call(
        _mse_elem_kernel,
        out_shape=jax.ShapeDtypeStruct((M, L), pred.dtype),
        grid=(pl.cdiv(M, row_tile),),
        in_specs=[
            pl.BlockSpec((row_tile, L), lambda i: (i, 0)),
            pl.BlockSpec((row_tile, L), lambda i: (i, 0)),
        ],
        out_specs=pl.BlockSpec((row_tile, L), lambda i: (i, 0)),
        compiler_params=pltpu.CompilerParams(
            dimension_semantics=("parallel",),
            vmem_limit_bytes=_VMEM_LIMIT_BYTES),
    )(p, g)
    return out.reshape(shape)


def flaw_detector_criterion(pred, gt, is_ssl=False, reduction=True):
    """JAX/Pallas equivalent of FlawDetectorCriterion.forward (NCHW inputs)."""
    del is_ssl  # unused in the reference forward pass
    if reduction:
        return _reduce_path(pred, gt)
    return _elem_path(pred, gt)


if __name__ == "__main__":
    key = jax.random.PRNGKey(0)
    k1, k2, k3, k4 = jax.random.split(key, 4)

    # Aligned case: batch=2, channels=4, spatial=16x16 -> D = 1024.
    pred = jax.random.normal(k1, (2, 4, 16, 16), dtype=jnp.float32)
    gt = jax.random.normal(k2, (2, 4, 16, 16), dtype=jnp.float32)

    loss = flaw_detector_criterion(pred, gt, reduction=True)
    jax.block_until_ready(loss)
    ref = jnp.mean((pred - gt) ** 2, axis=(1, 2, 3))
    assert loss.shape == (2,)
    assert jnp.allclose(loss, ref, atol=1e-5, rtol=1e-5), (loss, ref)

    loss_nr = flaw_detector_criterion(pred, gt, reduction=False)
    jax.block_until_ready(loss_nr)
    ref_nr = (pred - gt) ** 2
    assert loss_nr.shape == (2, 4, 16, 16)
    assert jnp.allclose(loss_nr, ref_nr, atol=1e-6, rtol=1e-5)

    # Non-power-of-two-friendly shape (D = 1152 = 9*128): exercises full-extent
    # (non multiple-of-8) sublane blocks and a partial final block in the
    # elementwise path -- with no padding copies.
    pred2 = jax.random.normal(k3, (2, 3, 16, 24), dtype=jnp.float32)
    gt2 = jax.random.normal(k4, (2, 3, 16, 24), dtype=jnp.float32)

    loss2 = flaw_detector_criterion(pred2, gt2, reduction=True)
    jax.block_until_ready(loss2)
    ref2 = jnp.mean((pred2 - gt2) ** 2, axis=(1, 2, 3))
    assert jnp.allclose(loss2, ref2, atol=1e-5, rtol=1e-5), (loss2, ref2)

    loss2_nr = flaw_detector_criterion(pred2, gt2, reduction=False)
    jax.block_until_ready(loss2_nr)
    assert jnp.allclose(loss2_nr, (pred2 - gt2) ** 2, atol=1e-6, rtol=1e-5)

    print("KERNEL_OK")
</pallas_src>

<mosaic_0001>
module attributes {stable_mosaic.version = 11 : i64} {
  func.func @_mse_reduce_kernel(%arg0: i32, %arg1: i32, %arg2: memref<1x8x128xf32, #tpu.memory_space<vmem>>, %arg3: memref<1x8x128xf32, #tpu.memory_space<vmem>>, %arg4: memref<1x1x128xf32, #tpu.memory_space<vmem>>, %arg5: memref<1x1x128xf32, #tpu.memory_space<vmem>>) attributes {dimension_semantics = [#tpu.dimension_semantics<parallel>, #tpu.dimension_semantics<arbitrary>], iteration_bounds = array<i64: 2, 1>, scalar_prefetch = 0 : i64, scratch_operands = 1 : i64, tpu.core_type = #tpu.core_type<tc>, window_params = [{transform_indices = @transform_0, window_bounds = array<i64: 1, 8, 128>}, {transform_indices = @transform_1, window_bounds = array<i64: 1, 8, 128>}, {transform_indices = @transform_2, window_bounds = array<i64: 1, 1, 128>}]} {
    %c0_i32 = arith.constant 0 : i32
    %0 = arith.cmpi eq, %arg1, %c0_i32 : i32
    %1 = arith.extui %0 : i1 to i32
    %c0_i32_0 = arith.constant 0 : i32
    %2 = arith.cmpi ne, %1, %c0_i32_0 : i32
    scf.if %2 {
      %cst_14 = arith.constant 0.000000e+00 : f32
      %15 = vector.broadcast %cst_14 : f32 to vector<1x1x128xf32>
      %c0_15 = arith.constant 0 : index
      %c0_16 = arith.constant 0 : index
      %c0_17 = arith.constant 0 : index
      %16 = vector.load %arg5[%c0_15, %c0_16, %c0_17] : memref<1x1x128xf32, #tpu.memory_space<vmem>>, vector<1x1x128xf32>
      tpu.vector_store %arg5[%c0_15, %c0_16, %c0_17], %15 {strides = array<i32>} : memref<1x1x128xf32, #tpu.memory_space<vmem>>, vector<1x1x128xf32>,
    } else {
    }
    %c0 = arith.constant 0 : index
    %c0_1 = arith.constant 0 : index
    %c0_2 = arith.constant 0 : index
    %3 = vector.load %arg2[%c0, %c0_1, %c0_2] : memref<1x8x128xf32, #tpu.memory_space<vmem>>, vector<1x8x128xf32>
    %c0_3 = arith.constant 0 : index
    %c0_4 = arith.constant 0 : index
    %c0_5 = arith.constant 0 : index
    %4 = vector.load %arg3[%c0_3, %c0_4, %c0_5] : memref<1x8x128xf32, #tpu.memory_space<vmem>>, vector<1x8x128xf32>
    %5 = arith.subf %3, %4 : vector<1x8x128xf32>
    %6 = arith.mulf %5, %5 : vector<1x8x128xf32>
    %c0_6 = arith.constant 0 : index
    %c0_7 = arith.constant 0 : index
    %c0_8 = arith.constant 0 : index
    %7 = vector.load %arg5[%c0_6, %c0_7, %c0_8] : memref<1x1x128xf32, #tpu.memory_space<vmem>>, vector<1x1x128xf32>
    %cst = arith.constant dense<0.000000e+00> : vector<1x128xf32>
    %8 = vector.multi_reduction <add>, %6, %cst [1] : vector<1x8x128xf32> to vector<1x128xf32>
    %9 = vector.shape_cast %8 : vector<1x128xf32> to vector<1x1x128xf32>
    %10 = arith.addf %7, %9 : vector<1x1x128xf32>
    %c0_9 = arith.constant 0 : index
    %c0_10 = arith.constant 0 : index
    %c0_11 = arith.constant 0 : index
    %11 = vector.load %arg5[%c0_9, %c0_10, %c0_11] : memref<1x1x128xf32, #tpu.memory_space<vmem>>, vector<1x1x128xf32>
    tpu.vector_store %arg5[%c0_9, %c0_10, %c0_11], %10 {strides = array<i32>} : memref<1x1x128xf32, #tpu.memory_space<vmem>>, vector<1x1x128xf32>,
    %c0_i32_12 = arith.constant 0 : i32
    %12 = arith.cmpi eq, %arg1, %c0_i32_12 : i32
    %13 = arith.extui %12 : i1 to i32
    %c0_i32_13 = arith.constant 0 : i32
    %14 = arith.cmpi ne, %13, %c0_i32_13 : i32
    scf.if %14 {
      %c0_14 = arith.constant 0 : index
      %c0_15 = arith.constant 0 : index
      %c0_16 = arith.constant 0 : index
      %15 = vector.load %arg5[%c0_14, %c0_15, %c0_16] : memref<1x1x128xf32, #tpu.memory_space<vmem>>, vector<1x1x128xf32>
      %cst_17 = arith.constant dense<0.000000e+00> : vector<1x1xf32>
      %16 = vector.multi_reduction <add>, %15, %cst_17 [2] : vector<1x1x128xf32> to vector<1x1xf32>
      %17 = vector.shape_cast %16 : vector<1x1xf32> to vector<1x1x1xf32>
      %cst_18 = arith.constant 9.765625E-4 : f32
      %18 = vector.broadcast %cst_18 : f32 to vector<1x1x1xf32>
      %19 = arith.mulf %17, %18 : vector<1x1x1xf32>
      %20 = vector.shape_cast %19 : vector<1x1x1xf32> to vector<1x1x1xf32>
      %21 = vector.broadcast %20 : vector<1x1x1xf32> to vector<1x1x128xf32>
      %c0_19 = arith.constant 0 : index
      %c0_20 = arith.constant 0 : index
      %c0_21 = arith.constant 0 : index
      %22 = vector.load %arg4[%c0_19, %c0_20, %c0_21] : memref<1x1x128xf32, #tpu.memory_space<vmem>>, vector<1x1x128xf32>
      tpu.vector_store %arg4[%c0_19, %c0_20, %c0_21], %21 {strides = array<i32>} : memref<1x1x128xf32, #tpu.memory_space<vmem>>, vector<1x1x128xf32>,
    } else {
    }
    return
  }
  func.func @transform_0(%arg0: i32, %arg1: i32) -> (i32, i32, i32) {
    %c0_i32 = arith.constant 0 : i32
    %c0_i32_0 = arith.constant 0 : i32
    return %arg0, %arg1, %c0_i32 : i32, i32, i32
  }
  func.func @transform_1(%arg0: i32, %arg1: i32) -> (i32, i32, i32) {
    %c0_i32 = arith.constant 0 : i32
    %c0_i32_0 = arith.constant 0 : i32
    return %arg0, %arg1, %c0_i32 : i32, i32, i32
  }
  func.func @transform_2(%arg0: i32, %arg1: i32) -> (i32, i32, i32) {
    %c0_i32 = arith.constant 0 : i32
    %c0_i32_0 = arith.constant 0 : i32
    %c0_i32_1 = arith.constant 0 : i32
    return %arg0, %c0_i32, %c0_i32_0 : i32, i32, i32
  }
}

</mosaic_0001>

<bundles_post_ra>
// kernel: tpu_custom_call.1
= control target key start
LH: loop header
LB: loop body
LE: loop exit
PB: predicated region body
PF: predicated region fallthrough
CT: control target
= control target key end

     0   :  { %7 = vsyncpa [#allocation4], 0  ;;  %s823_s0 = inlined_call_operand.hbm [shape: f32[2,8,128], index: 0, kind: input, shape index: {}]   ;;  %s824_s1 = inlined_call_operand.hbm [shape: f32[2,8,128], index: 1, kind: input, shape index: {}]   ;;  %s825_s2 = inlined_call_operand.hbm [shape: f32[2,1,128], index: 2, kind: output, shape index: {}]  }
   0x1   :  { %9 = vsyncpa [#allocation4 + $0x1], 0 }
   0x2   :  { %10 = vsyncpa [#allocation7], 0 }
   0x3   :  { %12 = vsyncpa [#allocation7 + $0x1], 0 }
   0x4   :  { %13 = vsyncpa [#allocation5], 0 }
   0x5   :  { %15 = vsyncpa [#allocation5 + $0x1], 0  ;;  %s602_s9 = smov 0   ;;  %s604_s10 = smov 0  }
   0x6   :  { %s606_s11 = smov 0   ;;  %s608_s12 = smov 0  }
   0x7   :  { %s610_s13 = smov 0   ;;  %s612_s14 = smov 0  }
   0x8 LB: > { %s353_s15 = sadd.s32 4294967295, %s581_s14   ;;  %s354_s16 = sadd.s32 4294967294, %s581_s14   ;;  %s581_s14 = sphi %s612_s14, %s21_s14   ;;  %s577_s13 = sphi %s610_s13, %s845_s13   ;;  %s573_s12 = sphi %s608_s12, %s844_s12   ;;  %s569_s11 = sphi %s606_s11, %s843_s11   ;;  %s565_s10 = sphi %s604_s10, %s842_s10   ;;  %s561_s9 = sphi %s602_s9, %s841_s9  }
   0x9   : > { %s33_s17 = sadd.s32 1, %s577_s13  ;;  %s42_s18 = sadd.s32 1, %s569_s11 }
   0xa   : > { %p35_p0 = scmp.ge.s32.totalorder %s33_s17, 2  ;;  %p49_p1 = scmp.ne.s32.totalorder %s569_s11, %s565_s10 }
   0xb   : > { %p50_p2 = scmp.eq.s32.totalorder %s581_s14, 0  ;;  %p55_p3 = scmp.ne.s32.totalorder %s565_s10, %s561_s9 }
   0xc   : > { %s847_s17 = smov (%p35_p0, %s33_s17), 0  ;;  %p56_p5 = scmp.eq.s32.totalorder %s353_s15, 0 }
   0xd   : > { %p643_p4 = por %p50_p2, %p49_p1  ;;  %s37_s20 = ssub.s32 %s577_s13, %s847_s17 }
   0xe   : > { %p107_p6 = scmp.eq.s32.totalorder %s353_s15, 1  ;;  %p40_p7 = scmp.eq.s32.totalorder %s37_s20, 0 }
   0xf   : > { %p649_p8 = por %p56_p5, %p55_p3  ;;  %p113_p10 = scmp.eq.s32.totalorder %s354_s16, 1 }
  0x10   : > { %p653_p9 = por %p107_p6, %p49_p1  ;;  %p384_p13 = scmp.lt.s32.totalorder %s581_s14, 2 }
  0x11   : > { %s829_s21 = scalar_select %p649_p8, 1, 0 }
  0x12   : > { %s830_s22 = scalar_select %p653_p9, 1, 0 }
  0x13   : > { %s658_s23 = scalar_select %p40_p7, %s569_s11, %s42_s18  }
  0x14   : > { %p660_p11 = por %p113_p10, %p55_p3  ;;  %s667_s25 = sand.u32 1, %s569_s11  }
  0x15   : > { %s357_s26 = sshll.u32 %s667_s25, 3  ;;  %s358_s27 = sshll.u32 %s577_s13, 7 }
  0x16   : > { %s831_s24 = scalar_select %p660_p11, 1, 0 }
  0x17   : > { %s676_s30 = scalar_lea.hbm %s823_s0, %s358_s27  ;;  %s137_s3 = scalar_lea.vmem [#allocation3], %s357_s26 }
  0x18   : > { %s145_s4 = sshll.u32 %s137_s3, 4  ;;  %p684_p0 = pnand %p384_p13, %p643_p4  ;;  %s680_s4 = int_to_ptr.vmem [resolvable:$true] %s145_s4 }
  0x19   : > { %s134_s6 = scalar_lea.sflag [#allocation4], %s667_s25  ;;  %s435_s7 = scalar_lea.hbm %s676_s30, 128 }
  0x1a   : > { %p436_p3 = scmp.ne.s32.totalorder %s676_s30, %s435_s7  ;;  %p437_p5 = pneg %p684_p0 }
  0x1b   : > { %s440_s16 = scalar_lea.hbm %s823_s0, 256  ;;  %p441_p4 = scmp.lt.u32.totalorder %s676_s30, %s823_s0 }
  0x1c   : > { %p438_p6 = pnand %p437_p5, %p436_p3  ;;  %p442_p10 = scmp.lt.u32.totalorder %s440_s16, %s435_s7 }
  0x1d   : > { %p444_p12 = scmp.lt.u32.totalorder %s435_s7, %s676_s30 }
  0x1e   : > { %p439_p7 = pneg %p438_p6  ;;  %p443_p13 = por %p442_p10, %p441_p4 }
  0x20   : > { %p445_p1 = por %p444_p12, %p443_p13 }
  0x22   : > { %p446_p2 = pnand %p445_p1, %p439_p7 }
  0x24   : > { %449 = shalt.err (!%p446_p2)
}
  0x25   : > { %s450_s20 = scalar_lea.vmem %s680_s4, 128  ;;  %s583_s28 = smov [#allocation3]  }
  0x26   : > { %p451_p3 = scmp.ne.s32.totalorder %s680_s4, %s450_s20  ;;  %s455_s29 = sshll.u32 %s583_s28, 4  ;;  %s456_s29 = int_to_ptr.vmem [resolvable:$false] %s455_s29 }
  0x27   : > { %s457_s3 = scalar_lea.vmem %s456_s29, 256  ;;  %p458_p9 = scmp.lt.s32.totalorder %s680_s4, %s456_s29 }
  0x28   : > { %p453_p6 = pnand %p451_p3, %p437_p5  ;;  %p459_p4 = scmp.lt.s32.totalorder %s457_s3, %s450_s20 }
  0x2a   : > { %p454_p11 = pneg %p453_p6  ;;  %p460_p10 = por %p459_p4, %p458_p9 }
  0x2c   : > { %p461_p12 = pnand %p460_p10, %p454_p11 }
  0x2e   : > { %464 = shalt.err (!%p461_p12)
}
  0x2f   : > { %376 = dma.hbm_to_vmem [thread:$0]  (!%p684_p0), %s676_s30, 128, %s680_s4, %s134_s6  }
  0x30   : > { %p833_p1 = scmp.lt.s32.totalorder %s581_s14, 3  ;;  %p834_p2 = scmp.ge.s32.totalorder %s581_s14, 1 }
  0x31   : > { %s729_s16 = scalar_lea.hbm %s824_s1, %s358_s27  ;;  %s156_s18 = scalar_lea.vmem [#allocation6], %s357_s26 }
  0x32   : > { %p720_p7 = pnand %p834_p2, %p833_p1  ;;  %s164_s19 = sshll.u32 %s156_s18, 4  ;;  %s165_s19 = int_to_ptr.vmem [resolvable:$true] %s164_s19 }
  0x33   : > { %s153_s30 = scalar_lea.sflag [#allocation7], %s667_s25  ;;  %s465_s4 = scalar_lea.hbm %s729_s16, 128 }
  0x34   : > { %s835_s7 = scalar_select %p720_p7, 1, 0 }
  0x35   : > { %p466_p9 = scmp.ne.s32.totalorder %s729_s16, %s465_s4  ;;  %s470_s27 = scalar_lea.hbm %s824_s1, 256 }
  0x36   : > { %p471_p3 = scmp.lt.u32.totalorder %s729_s16, %s824_s1  ;;  %p472_p6 = scmp.lt.u32.totalorder %s470_s27, %s465_s4 }
  0x37   : > { %p468_p11 = pnand %p466_p9, %p437_p5  ;;  %p474_p10 = scmp.lt.u32.totalorder %s465_s4, %s729_s16 }
  0x38   : > { %p473_p4 = por %p472_p6, %p471_p3 }
  0x39   : > { %p469_p13 = pneg %p468_p11 }
  0x3a   : > { %p475_p12 = por %p474_p10, %p473_p4 }
  0x3c   : > { %p476_p1 = pnand %p475_p12, %p469_p13 }
  0x3e   : > { %479 = shalt.err (!%p476_p1)
}
  0x3f   : > { %s480_s25 = scalar_lea.vmem %s165_s19, 128  ;;  %s584_s26 = smov [#allocation6]  }
  0x40   : > { %p481_p2 = scmp.ne.s32.totalorder %s165_s19, %s480_s25  ;;  %s485_s3 = sshll.u32 %s584_s26, 4  ;;  %s486_s3 = int_to_ptr.vmem [resolvable:$false] %s485_s3 }
  0x41   : > { %s487_s8 = scalar_lea.vmem %s486_s3, 256  ;;  %p488_p8 = scmp.lt.s32.totalorder %s165_s19, %s486_s3 }
  0x42   : > { %p483_p9 = pnand %p481_p2, %p437_p5  ;;  %p489_p7 = scmp.lt.s32.totalorder %s487_s8, %s480_s25 }
  0x44   : > { %p484_p11 = pneg %p483_p9  ;;  %p490_p3 = por %p489_p7, %p488_p8 }
  0x46   : > { %p491_p6 = pnand %p490_p3, %p484_p11 }
  0x48   : > { %494 = shalt.err (!%p491_p6)
}
  0x49   : > { %379 = dma.hbm_to_vmem [thread:$0]  (!%p684_p0), %s729_s16, 128, %s165_s19, %s153_s30  }
  0x4a   : > { %p836_p13 = scmp.ne.s32.totalorder %s835_s7, 0 }
  0x4b   : > { %s756_s15 = sand.u32 (!%p836_p13), 1, %s565_s10   ;;  %p837_p5 = scmp.ne.s32.totalorder (!%p836_p13), %s829_s21, 0 }
  0x4c   : > { %173 = sbr.rel (%p836_p13) target bundleno = 272 (0x110), region = 28  ;;  %s362_s18 = sshll.u32 (!%p836_p13), %s756_s15, 3 }
  0x4d   : > { %s176_s4 = scalar_lea.sflag (!%p836_p13), [#allocation4], %s756_s15  ;;  %s179_s6 = scalar_lea.vmem (!%p836_p13), [#allocation3], %s362_s18 }
  0x53   : > { %548 = dma.done.wait (%p837_p5), %s176_s4, 128  }
  0x54   : > { %550 = vsyncadd (%p837_p5), %s176_s4, 4294967168  ;;  %s185_s5 = scalar_lea.sflag [#allocation7], %s756_s15  ;;  %s188_s16 = scalar_lea.vmem [#allocation6], %s362_s18 }
  0x55   : > { %552 = dma.done.wait (%p837_p5), %s185_s5, 128  }
  0x56   : > { %554 = vsyncadd (%p837_p5), %s185_s5, 4294967168  ;;  %v585_v0 = vmov 0.0   ;;  %v218_v1 = vld [vmem:[%s179_s6] sm:$0xff]  ;;  %v219_v2 = vld [vmem:[%s188_s16] sm:$0xff]  ;;  %vm235_vm0 = vcmask 1040384   ;;  %s364_s21 = sshll.u32 %s573_s12, 4 }
  0x57   : > { %217 = vst [vmem:[#allocation2] sm:$0x1] %v585_v0  ;;  %v220_v3 = vsub.f32 %v218_v1, %v219_v2  ;;  %s212_s7 = scalar_lea.vmem [#allocation8], %s756_s15  ;;  %s774_s27 = scalar_lea.hbm %s825_s2, %s364_s21 }
  0x58   : > { %s254_s19 = sshll.u32 %s212_s7, 4  ;;  %s242_s28 = scalar_lea.sflag [#allocation5], %s756_s15  ;;  %s776_s19 = int_to_ptr.vmem [resolvable:$true] %s254_s19 }
  0x59   : > { %v221_v4 = vmul.f32 %v220_v3, %v220_v3  ;;  %s495_s29 = scalar_lea.vmem %s776_s19, 16  ;;  %p838_p0 = scmp.ne.s32.totalorder %s830_s22, 0 }
  0x5a   : > { %p496_p8 = scmp.ne.s32.totalorder %s776_s19, %s495_s29  ;;  %s586_s12 = smov [#allocation8]  }
  0x5b   : > { %v223_v5 = vrot.slane %v221_v4, 4  ;;  %s499_s25 = sshll.u32 %s586_s12, 4  ;;  %s500_s25 = int_to_ptr.vmem [resolvable:$false] %s499_s25 }
  0x5c   : > { %p497_p7 = pnand %p496_p8, %p838_p0  ;;  %s501_s26 = scalar_lea.vmem %s500_s25, 32 }
  0x5d   : > { %v224_v6 = vadd.f32 %v223_v5, %v221_v4  ;;  %p502_p10 = scmp.lt.s32.totalorder %s776_s19, %s500_s25  ;;  %p503_p12 = scmp.lt.s32.totalorder %s501_s26, %s495_s29 }
  0x5e   : > { %v222_v10 = vld [vmem:[#allocation2] sm:$0x1]  ;;  %p498_p4 = pneg %p497_p7 }
  0x5f   : > { %v225_v7 = vrot.slane %v224_v6, 2  ;;  %p504_p1 = por %p503_p12, %p502_p10 }
  0x61   : > { %v226_v8 = vadd.f32 %v225_v7, %v224_v6  ;;  %p505_p2 = pnand %p504_p1, %p498_p4 }
  0x63   : > { %v227_v9 = vrot.slane %v226_v8, 1 }
  0x65   : > { %v228_v11 = vadd.f32 %v227_v9, %v226_v8 }
  0x67   : > { %v229_v12 = vadd.f32 %v228_v11, %v222_v10 }
  0x69   : > { %230 = vst [vmem:[#allocation2] sm:$0x1] %v229_v12 }
  0x70   : > { %v234_v13 = vld [vmem:[#allocation2] sm:$0x1] }
  0x71   : > { %v236_v14 = vsel %vm235_vm0, %v234_v13, 0.0 }
  0x72   : > { %237 = vadd.xlane.f32.xlu0 %v236_v14 }
  0xff   : > { %v238_v15 = vpop.xlane.xlu0 %237 }
 0x100   : > { %v239_v16 = vmul.f32 0.0009765625, %v238_v15 }
 0x102   : > { %240 = vst [vmem:[%s212_s7] sm:$0x1] %v239_v16 }
 0x103   : > { %508 = shalt.err (!%p505_p2)
}
 0x104   : > { %s509_s3 = scalar_lea.hbm %s774_s27, 16  ;;  %s513_s18 = scalar_lea.hbm %s825_s2, 32 }
 0x105   : > { %p510_p9 = scmp.ne.s32.totalorder %s774_s27, %s509_s3  ;;  %p514_p6 = scmp.lt.u32.totalorder %s774_s27, %s825_s2 }
 0x106   : > { %p515_p13 = scmp.lt.u32.totalorder %s513_s18, %s509_s3  ;;  %p517_p8 = scmp.lt.u32.totalorder %s509_s3, %s774_s27 }
 0x107   : > { %p511_p11 = pnand %p510_p9, %p838_p0 }
 0x108   : > { %p516_p5 = por %p515_p13, %p514_p6 }
 0x109   : > { %p512_p3 = pneg %p511_p11 }
 0x10a   : > { %p518_p7 = por %p517_p8, %p516_p5 }
 0x10c   : > { %p519_p4 = pnand %p518_p7, %p512_p3 }
 0x10e   : > { %522 = shalt.err (!%p519_p4)
}
 0x10f   : > { %371 = dma.vmem_to_hbm [thread:$0]  (%p838_p0), %s776_s19, 16, %s774_s27, %s242_s28  }
 0x110 PF: > { %s266_s5 = sand.u32 1, %s561_s9   ;;  %p839_p10 = scmp.ne.s32.totalorder %s831_s24, 0 }
 0x111   : > { %p840_p12 = scmp.ge.s32.totalorder %s581_s14, 2  ;;  %s267_s16 = scalar_lea.sflag [#allocation5], %s266_s5 }
 0x113   : > { %p381_p1 = pnand %p840_p12, %p839_p10 }
 0x115   : > { %556 = dma.done.wait (!%p381_p1), %s267_s16, 16  }
 0x116   : > { %558 = vsyncadd (!%p381_p1), %s267_s16, 4294967280  ;;  %s21_s14 = sadd.s32 1, %s581_s14   ;;  %s841_s9 = smov %s565_s10 }
 0x117   : > { %p18_p2 = scmp.ge.s32.totalorder %s21_s14, 4   ;;  %s842_s10 = smov %s569_s11 }
 0x118   : > { %s843_s11 = smov %s658_s23  ;;  %s844_s12 = smov %s577_s13 }
 0x119   : > { %s845_s13 = smov %s847_s17  ;;  %20 = sbr.rel (!%p18_p2) target bundleno = 8 (0x8), region = 94 }
 0x120   :  { %271 = vsyncpa [#allocation4], 1 }
 0x121   :  { %273 = vsyncpa [#allocation4 + $0x1], 1 }
 0x122   :  { %274 = vsyncpa [#allocation7], 1 }
 0x123   :  { %276 = vsyncpa [#allocation7 + $0x1], 1 }
 0x124   :  { %277 = vsyncpa [#allocation5], 1 }
 0x125   :  { %279 = vsyncpa [#allocation5 + $0x1], 1 }

</bundles_post_ra>
